<compile_context>
chip_gen: v7x
topology: tpu7x:2x2x1
jax: 0.10.0
libtpu: 0.0.40
codegen_flags: <defaults>
</compile_context>

<pallas_src>
import jax
import jax.numpy as jnp
from jax.experimental import pallas as pl
from jax.experimental.pallas import tpu as pltpu

HIDDEN = 16


def _policy_kernel(xt_ref, w1t_ref, b1_ref, w2vt_ref, b2v_ref, outt_ref):
    # xt:   (S, TB)      -- batch in lanes (lane-dense)
    # w1t:  (H, S)       -- fc1 weight, torch-native (out, in) layout
    # b1:   (H, 1)
    # w2vt: (A+1, H)     -- fused [fc2_mean.weight ; value_layer.weight]
    # b2v:  (A+1, 1)
    # outt: (A+1, TB)    -- rows [0:A] = action_mean^T, row [A] = state_value^T

    # fc1 + ReLU (h^T is (H, TB): fully lane-dense VPU work)
    ht = jnp.dot(w1t_ref[...], xt_ref[...], preferred_element_type=jnp.float32)
    ht = jnp.maximum(ht + b1_ref[...], 0.0)

    # Fused mean + value heads: one MXU push, one lane-dense store.
    outt = (jnp.dot(w2vt_ref[...], ht, preferred_element_type=jnp.float32)
            + b2v_ref[...])
    outt_ref[...] = outt.astype(outt_ref.dtype)


def _round_up(n, m):
    return -(-n // m) * m


def _choose_batch_tile(B, block_b):
    """Pick a lane-aligned batch tile and grid length (no padding needed)."""
    block_b = max(128, _round_up(block_b, 128))
    if B <= block_b:
        # Single tile equal to the full batch dim (always a legal block shape).
        # Minimizes grid steps for v5e/v6e (1 TC); on v7x the whole kernel is
        # launch-overhead bound at these sizes anyway.
        return B, 1
    # Multiple tiles: balance them (round to 128 lanes) so that on v7x the
    # "parallel" grid axis splits evenly across the 2 TensorCores.
    n_tiles = pl.cdiv(B, block_b)          # >= 2
    tb = min(block_b, _round_up(pl.cdiv(B, n_tiles), 128))
    return tb, pl.cdiv(B, tb)


def policy_forward(x, params, variance, *, block_b=16384):
    """x: (B, state_space) float32; variance: scalar.

    Returns (action_mean (B, A), action_scale (B, A), state_value (B, 1)),
    i.e. the tensors defining Normal(action_mean, sqrt(variance)) plus value.
    """
    B, S = x.shape
    w1t, b1 = params["w1t"], params["b1"]          # (H, S), (H, 1)
    w2vt, b2v = params["w2vt"], params["b2v"]      # (A+1, H), (A+1, 1)
    H = w1t.shape[0]
    A = w2vt.shape[0] - 1

    # Batch-in-lanes layout for the kernel.
    xt = x.T                                        # (S, B)
    tb, grid_b = _choose_batch_tile(B, block_b)

    outt = pl.pallas_call(
        _policy_kernel,
        out_shape=jax.ShapeDtypeStruct((A + 1, B), jnp.float32),
        grid=(grid_b,),
        in_specs=[
            pl.BlockSpec((S, tb), lambda i: (0, i)),        # x^T tile (lane-dense)
            pl.BlockSpec((H, S), lambda i: (0, 0)),         # W1^T (replicated)
            pl.BlockSpec((H, 1), lambda i: (0, 0)),         # b1
            pl.BlockSpec((A + 1, H), lambda i: (0, 0)),     # fused W2^T||Wv^T
            pl.BlockSpec((A + 1, 1), lambda i: (0, 0)),     # fused b2||bv
        ],
        out_specs=pl.BlockSpec((A + 1, tb), lambda i: (0, i)),
        compiler_params=pltpu.CompilerParams(
            dimension_semantics=("parallel",)),             # 2-TC split on v7x
    )(xt, w1t, b1, w2vt, b2v)

    # Split the fused heads and restore (batch, feature) orientation; both are
    # tiny (A rows / 1 row).
    action_mean = outt[:A, :].T                     # (B, A)
    state_value = outt[A:, :].T                     # (B, 1)

    # action_scale = sqrt(variance): data-independent constant, stays outside
    # the kernel.
    action_scale = jnp.broadcast_to(
        jnp.sqrt(jnp.asarray(variance, dtype=jnp.float32)), (B, A))

    return action_mean, action_scale, state_value


def init_policy_params(key, state_space, action_space, hidden=HIDDEN):
    """Mirror Policy.init_weights(): normal(0,1) weights, zero biases.

    Weights are stored in torch's native (out_features, in_features) layout,
    which is exactly what the transposed (batch-in-lanes) kernel consumes.
    The fused mean||value head is precomputed here (once), not per forward.
    """
    k1, k2, k3 = jax.random.split(key, 3)
    w1t = jax.random.normal(k1, (hidden, state_space), dtype=jnp.float32)     # fc1.weight
    w2t = jax.random.normal(k2, (action_space, hidden), dtype=jnp.float32)    # fc2_mean.weight
    wvt = jax.random.normal(k3, (1, hidden), dtype=jnp.float32)               # value_layer.weight
    params = {
        "w1t": w1t,
        "b1": jnp.zeros((hidden, 1), dtype=jnp.float32),
        # Fused heads, precomputed at init (hoisted out of policy_forward).
        "w2vt": jnp.concatenate([w2t, wvt], axis=0),                 # (A+1, H)
        "b2v": jnp.zeros((action_space + 1, 1), dtype=jnp.float32),  # (A+1, 1)
        # Unfused copies kept for reference checks / external use.
        "w2t": w2t,
        "wvt": wvt,
        "b2": jnp.zeros((action_space, 1), dtype=jnp.float32),
        "bv": jnp.zeros((1, 1), dtype=jnp.float32),
        # self.sigma exists in the module but forward() uses `variance`.
        "sigma": jnp.array([100.0], dtype=jnp.float32),
    }
    return params


def _reference_forward(x, params):
    h = jnp.maximum(x @ params["w1t"].T + params["b1"].T, 0.0)
    mean = h @ params["w2t"].T + params["b2"].T
    value = h @ params["wvt"].T + params["bv"].T
    return mean, value


if __name__ == "__main__":
    key = jax.random.PRNGKey(0)
    kx, kp = jax.random.split(key)

    batch = 2
    state_space = 8
    action_space = 2

    x = jax.random.normal(kx, (batch, state_space), dtype=jnp.float32)
    params = init_policy_params(kp, state_space, action_space)
    variance = jnp.float32(25.0)

    action_mean, action_scale, state_value = policy_forward(x, params, variance)
    jax.block_until_ready((action_mean, action_scale, state_value))

    # Pure-JAX reference check of the hot path.
    mean_ref, value_ref = _reference_forward(x, params)
    assert action_mean.shape == (batch, action_space)
    assert state_value.shape == (batch, 1)
    assert jnp.allclose(action_mean, mean_ref, atol=1e-5)
    assert jnp.allclose(state_value, value_ref, atol=1e-5)
    assert jnp.allclose(action_scale, jnp.sqrt(variance))

    # Exercise the tiled (multi-step, ragged, unpadded) grid path:
    # B=1030 with block_b=512 -> balanced 128-aligned tiles, grid_b > 1,
    # ragged last block handled by Pallas (no wrapper pad/slice).
    big_b = 1030
    xb = jax.random.normal(jax.random.PRNGKey(1), (big_b, state_space),
                           dtype=jnp.float32)
    m_b, s_b, v_b = policy_forward(xb, params, variance, block_b=512)
    jax.block_until_ready((m_b, s_b, v_b))
    mean_ref_b, value_ref_b = _reference_forward(xb, params)
    assert m_b.shape == (big_b, action_space)
    assert v_b.shape == (big_b, 1)
    assert jnp.allclose(m_b, mean_ref_b, atol=1e-4)
    assert jnp.allclose(v_b, value_ref_b, atol=1e-4)
    assert jnp.all(jnp.isfinite(m_b)) and jnp.all(jnp.isfinite(v_b))

    print("KERNEL_OK")
</pallas_src>

<mosaic_0001>
module attributes {stable_mosaic.version = 11 : i64} {
  func.func @_policy_kernel(%arg0: i32, %arg1: memref<8x2xf32, #tpu.memory_space<vmem>>, %arg2: memref<16x8xf32, #tpu.memory_space<vmem>>, %arg3: memref<16x1xf32, #tpu.memory_space<vmem>>, %arg4: memref<3x16xf32, #tpu.memory_space<vmem>>, %arg5: memref<3x1xf32, #tpu.memory_space<vmem>>, %arg6: memref<3x2xf32, #tpu.memory_space<vmem>>) attributes {dimension_semantics = [#tpu.dimension_semantics<parallel>], iteration_bounds = array<i64: 1>, scalar_prefetch = 0 : i64, scratch_operands = 0 : i64, tpu.core_type = #tpu.core_type<tc>, window_params = [{transform_indices = @transform_0, window_bounds = array<i64: 8, 2>}, {pipeline_mode = #tpu.pipeline_mode<synchronous>, transform_indices = @transform_1, window_bounds = array<i64: 16, 8>}, {pipeline_mode = #tpu.pipeline_mode<synchronous>, transform_indices = @transform_2, window_bounds = array<i64: 16, 1>}, {pipeline_mode = #tpu.pipeline_mode<synchronous>, transform_indices = @transform_3, window_bounds = array<i64: 3, 16>}, {pipeline_mode = #tpu.pipeline_mode<synchronous>, transform_indices = @transform_4, window_bounds = array<i64: 3, 1>}, {transform_indices = @transform_5, window_bounds = array<i64: 3, 2>}]} {
    %c0 = arith.constant 0 : index
    %c0_0 = arith.constant 0 : index
    %0 = vector.load %arg2[%c0, %c0_0] : memref<16x8xf32, #tpu.memory_space<vmem>>, vector<16x8xf32>
    %c0_1 = arith.constant 0 : index
    %c0_2 = arith.constant 0 : index
    %1 = vector.load %arg1[%c0_1, %c0_2] : memref<8x2xf32, #tpu.memory_space<vmem>>, vector<8x2xf32>
    %cst = arith.constant dense<0.000000e+00> : vector<16x2xf32>
    %2 = tpu.matmul %0, %1, %cst {dimension_numbers = #tpu.dot_dimension_numbers<[1], [0], [0], [1], [0, 0, 1, 1], [], []>} : vector<16x8xf32>, vector<8x2xf32>, vector<16x2xf32> -> vector<16x2xf32>
    %c0_3 = arith.constant 0 : index
    %c0_4 = arith.constant 0 : index
    %3 = vector.load %arg3[%c0_3, %c0_4] : memref<16x1xf32, #tpu.memory_space<vmem>>, vector<16x1xf32>
    %4 = vector.broadcast %3 : vector<16x1xf32> to vector<16x2xf32>
    %5 = arith.addf %2, %4 : vector<16x2xf32>
    %cst_5 = arith.constant 0.000000e+00 : f32
    %6 = vector.broadcast %cst_5 : f32 to vector<16x2xf32>
    %7 = arith.maximumf %5, %6 : vector<16x2xf32>
    %c0_6 = arith.constant 0 : index
    %c0_7 = arith.constant 0 : index
    %8 = vector.load %arg4[%c0_6, %c0_7] : memref<3x16xf32, #tpu.memory_space<vmem>>, vector<3x16xf32>
    %cst_8 = arith.constant dense<0.000000e+00> : vector<3x2xf32>
    %9 = tpu.matmul %8, %7, %cst_8 {dimension_numbers = #tpu.dot_dimension_numbers<[1], [0], [0], [1], [0, 0, 1, 1], [], []>} : vector<3x16xf32>, vector<16x2xf32>, vector<3x2xf32> -> vector<3x2xf32>
    %c0_9 = arith.constant 0 : index
    %c0_10 = arith.constant 0 : index
    %10 = vector.load %arg5[%c0_9, %c0_10] : memref<3x1xf32, #tpu.memory_space<vmem>>, vector<3x1xf32>
    %11 = vector.broadcast %10 : vector<3x1xf32> to vector<3x2xf32>
    %12 = arith.addf %9, %11 : vector<3x2xf32>
    %c0_11 = arith.constant 0 : index
    %c0_12 = arith.constant 0 : index
    %13 = vector.load %arg6[%c0_11, %c0_12] : memref<3x2xf32, #tpu.memory_space<vmem>>, vector<3x2xf32>
    tpu.vector_store %arg6[%c0_11, %c0_12], %12 {strides = array<i32>} : memref<3x2xf32, #tpu.memory_space<vmem>>, vector<3x2xf32>,
    return
  }
  func.func @transform_0(%arg0: i32) -> (i32, i32) {
    %c0_i32 = arith.constant 0 : i32
    %c0_i32_0 = arith.constant 0 : i32
    return %c0_i32, %arg0 : i32, i32
  }
  func.func @transform_1(%arg0: i32) -> (i32, i32) {
    %c0_i32 = arith.constant 0 : i32
    %c0_i32_0 = arith.constant 0 : i32
    %c0_i32_1 = arith.constant 0 : i32
    return %c0_i32, %c0_i32_0 : i32, i32
  }
  func.func @transform_2(%arg0: i32) -> (i32, i32) {
    %c0_i32 = arith.constant 0 : i32
    %c0_i32_0 = arith.constant 0 : i32
    %c0_i32_1 = arith.constant 0 : i32
    return %c0_i32, %c0_i32_0 : i32, i32
  }
  func.func @transform_3(%arg0: i32) -> (i32, i32) {
    %c0_i32 = arith.constant 0 : i32
    %c0_i32_0 = arith.constant 0 : i32
    %c0_i32_1 = arith.constant 0 : i32
    return %c0_i32, %c0_i32_0 : i32, i32
  }
  func.func @transform_4(%arg0: i32) -> (i32, i32) {
    %c0_i32 = arith.constant 0 : i32
    %c0_i32_0 = arith.constant 0 : i32
    %c0_i32_1 = arith.constant 0 : i32
    return %c0_i32, %c0_i32_0 : i32, i32
  }
  func.func @transform_5(%arg0: i32) -> (i32, i32) {
    %c0_i32 = arith.constant 0 : i32
    %c0_i32_0 = arith.constant 0 : i32
    return %c0_i32, %arg0 : i32, i32
  }
}

</mosaic_0001>

<bundles_post_ra>
// kernel: tpu_custom_call.1
= control target key start
LH: loop header
LB: loop body
LE: loop exit
PB: predicated region body
PF: predicated region fallthrough
CT: control target
= control target key end

     0   :  { %vm35_vm0 = vcmask 64512   ;;  %v236_v3 = vmov 0   ;;  %v237_v6 = vmov 0.0|0.0   ;;  %vm238_vm1 = vmmov 0   ;;  %s294_s0 = inlined_call_operand.vmem [shape: f32[8,2], index: 0, kind: input, shape index: {}]   ;;  %s295_s1 = inlined_call_operand.vmem [shape: f32[16,8], index: 1, kind: input, shape index: {}]   ;;  %s296_s2 = inlined_call_operand.vmem [shape: f32[16,1], index: 2, kind: input, shape index: {}]   ;;  %s297_s4 = inlined_call_operand.vmem [shape: f32[3,1], index: 4, kind: input, shape index: {}]   ;;  %s298_s3 = inlined_call_operand.vmem [shape: f32[3,16], index: 3, kind: input, shape index: {}]   ;;  %s299_s5 = inlined_call_operand.vmem [shape: f32[3,2], index: 5, kind: output, shape index: {}]  }
   0x1   :  { %v22_v0 = vld [vmem:[%s294_s0] sm:$0xff]  ;;  %v21_v2 = vld [vmem:[%s295_s1 + $0x8] sm:$0xff]  ;;  %234 = vset.pattern.permute.xlu0 %v236_v3  ;;  %235 = vset.pattern.permute.xlu1 %v236_v3  ;;  %v239_v7 = vmov 0.0   ;;  %vm126_vm2 = vcmask 130048   ;;  %vm200_vm3 = vcmask 10240  }
   0x2   :  { %v20_v1 = vld [vmem:[%s295_s1] sm:$0xff]  ;;  %215 = vmatprep.subr.mxu0 %v22_v0  ;;  %v24_v5 = vld [vmem:[%s296_s2 + $0x8] sm:$0xff]  ;;  %227 = vmatprep.subr.bf16.mxu1 %v237_v6 }
   0x3   :  { %217 = vmatprep.mubr.msk.f32.mxu0 %vm35_vm0, %v20_v1  ;;  %v23_v4 = vld [vmem:[%s296_s2] sm:$0xff]  ;;  %216 = vmatpush3.msra.mxu0 %v22_v0 }
   0x4   :  { %27 = vperm.xlu0 %234, %v23_v4   ;;  %218 = vmatmul.mubr.msk.f32.vlgmr.msra.gmra.mrb[0].mxu0 %vm35_vm0, %v21_v2  ;;  %v120_v8 = vld [vmem:[%s297_s4] sm:$0x7] }
   0x5   :  { %224 = vmatprep.mubr.msk.f32.mxu1 %vm238_vm1, %v239_v7  ;;  %123 = vperm.xlu1 %235, %v120_v8   ;;  %v119_v18 = vld [vmem:[%s298_s3] sm:$0x7] }
   0x8   :  { %32 = vperm.xlu0 %234, %v24_v5  }
  0x83   :  { %v28_v9 = vpop.permute.xlu0 %27 }
  0x84   :  { %v124_v19 = vpop.permute.xlu1 %123 }
  0x87   :  { %v33_v10 = vpop.permute.xlu0 %32 }
  0xd7   :  { %v219_v11 = vpop.f32.mrb[0].mxu0 }
  0xd8   :  { %v114_v12 = vadd.f32 %v219_v11, %v33_v10  ;;  %v108_v13 = vpop.f32.mrb[1].mxu0 }
  0xd9   :  { %v109_v14 = vadd.f32 %v108_v13, %v28_v9 }
  0xda   :  { %v118_v15 = vmax.f32 %v114_v12, 0.0 }
  0xdb   :  { %v117_v16 = vmax.f32 %v109_v14, 0.0 }
  0xdd   :  { %v228_v17 = vpack.c.bf16 %v118_v15, %v117_v16 }
  0xdf   :  { %229 = vmatpush3.bf16.msra.mxu1 %v228_v17 }
  0xe2   :  { %225 = vmatmul.mubr.msk.f32.vlgmr.msra.gmra.mrb[0].mxu1 %vm126_vm2, %v119_v18 }
 0x1b5   :  { %v196_v20 = vpop.f32.mrb[0].mxu1 }
 0x1b6   :  { %v197_v21 = vadd.f32 %v196_v20, %v124_v19  ;;  %v226_v22 = vpop.f32.mrb[1].mxu1 }
 0x1b8   :  { %201 = vst.msk [vmem:[%s299_s5] sm:$0x7] %vm200_vm3, %v197_v21 }

</bundles_post_ra>
